<compile_context>
chip_gen: v7x
topology: tpu7x:2x2x1
jax: 0.10.0
libtpu: 0.0.40
codegen_flags: <defaults>
</compile_context>

<pallas_src>
import functools

import jax
import jax.numpy as jnp
from jax.experimental import pallas as pl
from jax.experimental.pallas import tpu as pltpu


_OUT_LANES = 128  # lane-dense merged output width: [y | logdet | zero pad]


def _relu(v):
    return jnp.maximum(v, 0.0)


def realnvp2d_kernel(
    x_ref, masks_ref,
    w1_ref, b1_ref, w2_ref, b2_ref, w3_ref, b3_ref, scale_ref,
    out_ref,
    *, num_layers, input_dim,
):
    d = input_dim
    y = x_ref[...].astype(jnp.float32)                     # (B, D)
    bsz = y.shape[0]
    logdet = jnp.zeros((bsz, 1), jnp.float32)

    # Static unrolled loop over coupling layers (L is small).  Per-layer ref
    # slices are zero-cost views, so weight live ranges stay bounded to one
    # layer instead of the whole unrolled body.
    # TODO(synk): switch to lax.fori_loop(..., unroll=True) over the layer
    # axis if num_layers grows past ~8 (vreg pressure).
    for l in range(num_layers):
        mask = masks_ref[l:l + 1, :]                       # (1, D)
        one_minus = 1.0 - mask

        xm = y * mask                                      # (B, D)

        # --- fc1 (scale|translation fused): K = D contraction on the VPU ---
        w1 = w1_ref[l]                                     # (D, 2H)
        h = b1_ref[l:l + 1, :]                             # (1, 2H) -> bcast
        for c in range(d):
            h = h + xm[:, c:c + 1] * w1[c:c + 1, :]        # (B,1)*(1,2H)
        h = _relu(h)                                       # (B, 2H)

        # --- fc2 (fused block-diagonal): the only big MXU matmul per layer ---
        h = _relu(
            jnp.dot(h, w2_ref[l], preferred_element_type=jnp.float32)
            + b2_ref[l:l + 1, :])                          # (B, 2H)

        # --- fc3 (fused block-diagonal, N = 2D): one small MXU matmul ---
        o3 = (jnp.dot(h, w3_ref[l], preferred_element_type=jnp.float32)
              + b3_ref[l:l + 1, :])                        # (B, 2D)

        s = _relu(o3[:, :d]) * scale_ref[l:l + 1, :]       # (B, D)
        t = o3[:, d:]                                      # (B, D)

        # Affine coupling update (matches PyTorch reference; exp(s) may
        # overflow for huge s, same as the reference).
        y = mask * y + one_minus * (y * jnp.exp(s) + t)

        # logdet += sum((1 - mask) * s, -1), unrolled over D (pure VPU,
        # no XLU cross-lane reduce on a 2-wide vector).
        for c in range(d):
            logdet = logdet + one_minus[:, c:c + 1] * s[:, c:c + 1]

    # Final squashing head: y = 4*tanh(y);
    # logdet += sum(log|4*(1 - tanh^2)|) -- can hit -inf when tanh saturates,
    # exactly like the PyTorch reference.
    th = jnp.tanh(y)
    log_term = jnp.log(jnp.abs(4.0 * (1.0 - th * th)))     # (B, D)
    for c in range(d):
        logdet = logdet + log_term[:, c:c + 1]
    y = 4.0 * th

    # Single lane-dense store: [y | logdet | zeros] -> (B, 128).
    pad = jnp.zeros((bsz, _OUT_LANES - (d + 1)), jnp.float32)
    out_ref[...] = jnp.concatenate([y, logdet, pad], axis=-1)


def realnvp2d_forward(x, packed, *, batch_block=None):
    b, d = x.shape
    num_layers = packed["masks"].shape[0]

    if batch_block is None:
        batch_block = b if b <= 256 else 256
    if b % batch_block != 0:
        batch_block = b
    grid = (b // batch_block,)

    def full_spec(shape):
        nd = len(shape)
        return pl.BlockSpec(shape, lambda i, _nd=nd: (0,) * _nd)

    args = (x, packed["masks"], packed["w1"], packed["b1"], packed["w2"],
            packed["b2"], packed["w3"], packed["b3"], packed["scale"])

    in_specs = [pl.BlockSpec((batch_block, d), lambda i: (i, 0))]
    in_specs += [full_spec(a.shape) for a in args[1:]]

    out = pl.pallas_call(
        functools.partial(realnvp2d_kernel,
                          num_layers=num_layers, input_dim=d),
        grid=grid,
        out_shape=jax.ShapeDtypeStruct((b, _OUT_LANES), jnp.float32),
        in_specs=in_specs,
        out_specs=pl.BlockSpec((batch_block, _OUT_LANES), lambda i: (i, 0)),
        compiler_params=pltpu.CompilerParams(
            dimension_semantics=("parallel",)),
    )(*args)
    return out[:, :d], out[:, d]


def init_params(key, masks, input_dim, hidden_dim):
    """Deterministic synthetic parameters (shapes match the PyTorch module)."""
    num_layers = masks.shape[0]
    keys = jax.random.split(key, num_layers * 13)
    ki = iter(keys)

    def lin(k, fan_in, fan_out):
        bound = 1.0 / jnp.sqrt(fan_in)
        kw, kb = jax.random.split(k)
        w = jax.random.uniform(kw, (fan_in, fan_out), jnp.float32, -bound, bound)
        b = jax.random.uniform(kb, (fan_out,), jnp.float32, -bound, bound)
        return w, b

    p = {k: [] for k in ("sw1", "sb1", "sw2", "sb2", "sw3", "sb3", "scale",
                         "tw1", "tb1", "tw2", "tb2", "tw3", "tb3")}
    for _ in range(num_layers):
        w, b = lin(next(ki), input_dim, hidden_dim); p["sw1"].append(w); p["sb1"].append(b)
        w, b = lin(next(ki), hidden_dim, hidden_dim); p["sw2"].append(w); p["sb2"].append(b)
        w, b = lin(next(ki), hidden_dim, input_dim); p["sw3"].append(w); p["sb3"].append(b)
        p["scale"].append(jax.random.normal(next(ki), (input_dim,), jnp.float32))
        w, b = lin(next(ki), input_dim, hidden_dim); p["tw1"].append(w); p["tb1"].append(b)
        w, b = lin(next(ki), hidden_dim, hidden_dim); p["tw2"].append(w); p["tb2"].append(b)
        w, b = lin(next(ki), hidden_dim, input_dim); p["tw3"].append(w); p["tb3"].append(b)
    params = {k: jnp.stack(v, axis=0) for k, v in p.items()}
    params["masks"] = masks
    return params


def pack_params(params):
    """Fuse scale/translation nets: concat fc1, block-diag fc2/fc3 (host-side, once)."""
    sw1, tw1 = params["sw1"], params["tw1"]           # (L, D, H)
    sw2, tw2 = params["sw2"], params["tw2"]           # (L, H, H)
    sw3, tw3 = params["sw3"], params["tw3"]           # (L, H, D)

    z2 = jnp.zeros_like(sw2)
    w2 = jnp.concatenate(
        [jnp.concatenate([sw2, z2], axis=-1),
         jnp.concatenate([z2, tw2], axis=-1)], axis=1)     # (L, 2H, 2H)

    z3 = jnp.zeros_like(sw3)
    w3 = jnp.concatenate(
        [jnp.concatenate([sw3, z3], axis=-1),
         jnp.concatenate([z3, tw3], axis=-1)], axis=1)     # (L, 2H, 2D)

    return {
        "masks": params["masks"],
        "w1": jnp.concatenate([sw1, tw1], axis=-1),        # (L, D, 2H)
        "b1": jnp.concatenate([params["sb1"], params["tb1"]], axis=-1),
        "w2": w2,
        "b2": jnp.concatenate([params["sb2"], params["tb2"]], axis=-1),
        "w3": w3,
        "b3": jnp.concatenate([params["sb3"], params["tb3"]], axis=-1),
        "scale": params["scale"],
    }


def realnvp2d_reference(x, params):
    """Pure-JAX reference mirroring the PyTorch forward (for validation)."""
    y = x
    logdet_tot = jnp.zeros((x.shape[0],), jnp.float32)
    num_layers = params["masks"].shape[0]
    for l in range(num_layers):
        m = params["masks"][l]
        xm = y * m
        s = jax.nn.relu(xm @ params["sw1"][l] + params["sb1"][l])
        s = jax.nn.relu(s @ params["sw2"][l] + params["sb2"][l])
        s = jax.nn.relu(s @ params["sw3"][l] + params["sb3"][l]) * params["scale"][l]
        t = jax.nn.relu(xm @ params["tw1"][l] + params["tb1"][l])
        t = jax.nn.relu(t @ params["tw2"][l] + params["tb2"][l])
        t = t @ params["tw3"][l] + params["tb3"][l]
        y = m * y + (1 - m) * (y * jnp.exp(s) + t)
        logdet_tot = logdet_tot + jnp.sum((1 - m) * s, axis=-1)
    th = jnp.tanh(y)
    logdet_tot = logdet_tot + jnp.sum(jnp.log(jnp.abs(4.0 * (1.0 - th ** 2))), -1)
    return 4.0 * th, logdet_tot


if __name__ == "__main__":
    input_dim = 2          # RealNVP for 2-D distributions
    hidden_dim = 32
    batch = 8
    # Alternating checkerboard masks over the 2 coordinates, 4 coupling layers.
    masks = jnp.array([[1.0, 0.0], [0.0, 1.0], [1.0, 0.0], [0.0, 1.0]],
                      dtype=jnp.float32)

    key = jax.random.PRNGKey(0)
    k_param, k_x = jax.random.split(key)
    raw_params = init_params(k_param, masks, input_dim, hidden_dim)
    packed_params = pack_params(raw_params)
    x = jax.random.normal(k_x, (batch, input_dim), jnp.float32)

    y, logdet = realnvp2d_forward(x, packed_params)
    jax.block_until_ready((y, logdet))

    y_ref, logdet_ref = realnvp2d_reference(x, raw_params)
    assert jnp.allclose(y, y_ref, atol=1e-4, rtol=1e-4)
    assert jnp.allclose(logdet, logdet_ref, atol=1e-4, rtol=1e-4)

    print("KERNEL_OK")
</pallas_src>

<mosaic_0001>
module attributes {stable_mosaic.version = 11 : i64} {
  func.func @realnvp2d_kernel(%arg0: i32, %arg1: memref<8x2xf32, #tpu.memory_space<vmem>>, %arg2: memref<4x2xf32, #tpu.memory_space<vmem>>, %arg3: memref<4x2x64xf32, #tpu.memory_space<vmem>>, %arg4: memref<4x64xf32, #tpu.memory_space<vmem>>, %arg5: memref<4x64x64xf32, #tpu.memory_space<vmem>>, %arg6: memref<4x64xf32, #tpu.memory_space<vmem>>, %arg7: memref<4x64x4xf32, #tpu.memory_space<vmem>>, %arg8: memref<4x4xf32, #tpu.memory_space<vmem>>, %arg9: memref<4x2xf32, #tpu.memory_space<vmem>>, %arg10: memref<8x128xf32, #tpu.memory_space<vmem>>) attributes {dimension_semantics = [#tpu.dimension_semantics<parallel>], iteration_bounds = array<i64: 1>, scalar_prefetch = 0 : i64, scratch_operands = 0 : i64, tpu.core_type = #tpu.core_type<tc>, window_params = [{transform_indices = @transform_0, window_bounds = array<i64: 8, 2>}, {pipeline_mode = #tpu.pipeline_mode<synchronous>, transform_indices = @transform_1, window_bounds = array<i64: 4, 2>}, {pipeline_mode = #tpu.pipeline_mode<synchronous>, transform_indices = @transform_2, window_bounds = array<i64: 4, 2, 64>}, {pipeline_mode = #tpu.pipeline_mode<synchronous>, transform_indices = @transform_3, window_bounds = array<i64: 4, 64>}, {pipeline_mode = #tpu.pipeline_mode<synchronous>, transform_indices = @transform_4, window_bounds = array<i64: 4, 64, 64>}, {pipeline_mode = #tpu.pipeline_mode<synchronous>, transform_indices = @transform_5, window_bounds = array<i64: 4, 64>}, {pipeline_mode = #tpu.pipeline_mode<synchronous>, transform_indices = @transform_6, window_bounds = array<i64: 4, 64, 4>}, {pipeline_mode = #tpu.pipeline_mode<synchronous>, transform_indices = @transform_7, window_bounds = array<i64: 4, 4>}, {pipeline_mode = #tpu.pipeline_mode<synchronous>, transform_indices = @transform_8, window_bounds = array<i64: 4, 2>}, {transform_indices = @transform_9, window_bounds = array<i64: 8, 128>}]} {
    %c0 = arith.constant 0 : index
    %c0_0 = arith.constant 0 : index
    %0 = vector.load %arg1[%c0, %c0_0] : memref<8x2xf32, #tpu.memory_space<vmem>>, vector<8x2xf32>
    %cst = arith.constant 0.000000e+00 : f32
    %1 = vector.broadcast %cst : f32 to vector<8x1xf32>
    %c0_1 = arith.constant 0 : index
    %c0_2 = arith.constant 0 : index
    %2 = vector.load %arg2[%c0_1, %c0_2] : memref<4x2xf32, #tpu.memory_space<vmem>>, vector<1x2xf32>
    %cst_3 = arith.constant 1.000000e+00 : f32
    %3 = vector.broadcast %cst_3 : f32 to vector<1x2xf32>
    %4 = arith.subf %3, %2 : vector<1x2xf32>
    %5 = vector.broadcast %2 : vector<1x2xf32> to vector<8x2xf32>
    %6 = arith.mulf %0, %5 : vector<8x2xf32>
    %c0_4 = arith.constant 0 : index
    %c0_5 = arith.constant 0 : index
    %c0_6 = arith.constant 0 : index
    %7 = vector.load %arg3[%c0_4, %c0_5, %c0_6] : memref<4x2x64xf32, #tpu.memory_space<vmem>>, vector<1x2x64xf32>
    %8 = vector.shape_cast %7 : vector<1x2x64xf32> to vector<2x64xf32>
    %c0_7 = arith.constant 0 : index
    %c0_8 = arith.constant 0 : index
    %9 = vector.load %arg4[%c0_7, %c0_8] : memref<4x64xf32, #tpu.memory_space<vmem>>, vector<1x64xf32>
    %10 = vector.extract_strided_slice %6 {offsets = [0, 0], sizes = [8, 1], strides = [1, 1]} : vector<8x2xf32> to vector<8x1xf32>
    %11 = vector.extract_strided_slice %8 {offsets = [0, 0], sizes = [1, 64], strides = [1, 1]} : vector<2x64xf32> to vector<1x64xf32>
    %12 = vector.broadcast %10 : vector<8x1xf32> to vector<8x64xf32>
    %13 = vector.broadcast %11 : vector<1x64xf32> to vector<8x64xf32>
    %14 = arith.mulf %12, %13 : vector<8x64xf32>
    %15 = vector.broadcast %9 : vector<1x64xf32> to vector<8x64xf32>
    %16 = arith.addf %15, %14 : vector<8x64xf32>
    %17 = vector.extract_strided_slice %6 {offsets = [0, 1], sizes = [8, 1], strides = [1, 1]} : vector<8x2xf32> to vector<8x1xf32>
    %18 = vector.extract_strided_slice %8 {offsets = [1, 0], sizes = [1, 64], strides = [1, 1]} : vector<2x64xf32> to vector<1x64xf32>
    %19 = vector.broadcast %17 : vector<8x1xf32> to vector<8x64xf32>
    %20 = vector.broadcast %18 : vector<1x64xf32> to vector<8x64xf32>
    %21 = arith.mulf %19, %20 : vector<8x64xf32>
    %22 = arith.addf %16, %21 : vector<8x64xf32>
    %cst_9 = arith.constant 0.000000e+00 : f32
    %23 = vector.broadcast %cst_9 : f32 to vector<8x64xf32>
    %24 = arith.maximumf %22, %23 : vector<8x64xf32>
    %c0_10 = arith.constant 0 : index
    %c0_11 = arith.constant 0 : index
    %c0_12 = arith.constant 0 : index
    %25 = vector.load %arg5[%c0_10, %c0_11, %c0_12] : memref<4x64x64xf32, #tpu.memory_space<vmem>>, vector<1x64x64xf32>
    %26 = vector.shape_cast %25 : vector<1x64x64xf32> to vector<64x64xf32>
    %cst_13 = arith.constant dense<0.000000e+00> : vector<8x64xf32>
    %27 = tpu.matmul %24, %26, %cst_13 {dimension_numbers = #tpu.dot_dimension_numbers<[1], [0], [0], [1], [0, 0, 1, 1], [], []>} : vector<8x64xf32>, vector<64x64xf32>, vector<8x64xf32> -> vector<8x64xf32>
    %c0_14 = arith.constant 0 : index
    %c0_15 = arith.constant 0 : index
    %28 = vector.load %arg6[%c0_14, %c0_15] : memref<4x64xf32, #tpu.memory_space<vmem>>, vector<1x64xf32>
    %29 = vector.broadcast %28 : vector<1x64xf32> to vector<8x64xf32>
    %30 = arith.addf %27, %29 : vector<8x64xf32>
    %cst_16 = arith.constant 0.000000e+00 : f32
    %31 = vector.broadcast %cst_16 : f32 to vector<8x64xf32>
    %32 = arith.maximumf %30, %31 : vector<8x64xf32>
    %c0_17 = arith.constant 0 : index
    %c0_18 = arith.constant 0 : index
    %c0_19 = arith.constant 0 : index
    %33 = vector.load %arg7[%c0_17, %c0_18, %c0_19] : memref<4x64x4xf32, #tpu.memory_space<vmem>>, vector<1x64x4xf32>
    %34 = vector.shape_cast %33 : vector<1x64x4xf32> to vector<64x4xf32>
    %cst_20 = arith.constant dense<0.000000e+00> : vector<8x4xf32>
    %35 = tpu.matmul %32, %34, %cst_20 {dimension_numbers = #tpu.dot_dimension_numbers<[1], [0], [0], [1], [0, 0, 1, 1], [], []>} : vector<8x64xf32>, vector<64x4xf32>, vector<8x4xf32> -> vector<8x4xf32>
    %c0_21 = arith.constant 0 : index
    %c0_22 = arith.constant 0 : index
    %36 = vector.load %arg8[%c0_21, %c0_22] : memref<4x4xf32, #tpu.memory_space<vmem>>, vector<1x4xf32>
    %37 = vector.broadcast %36 : vector<1x4xf32> to vector<8x4xf32>
    %38 = arith.addf %35, %37 : vector<8x4xf32>
    %39 = vector.extract_strided_slice %38 {offsets = [0, 0], sizes = [8, 2], strides = [1, 1]} : vector<8x4xf32> to vector<8x2xf32>
    %cst_23 = arith.constant 0.000000e+00 : f32
    %40 = vector.broadcast %cst_23 : f32 to vector<8x2xf32>
    %41 = arith.maximumf %39, %40 : vector<8x2xf32>
    %c0_24 = arith.constant 0 : index
    %c0_25 = arith.constant 0 : index
    %42 = vector.load %arg9[%c0_24, %c0_25] : memref<4x2xf32, #tpu.memory_space<vmem>>, vector<1x2xf32>
    %43 = vector.broadcast %42 : vector<1x2xf32> to vector<8x2xf32>
    %44 = arith.mulf %41, %43 : vector<8x2xf32>
    %45 = vector.extract_strided_slice %38 {offsets = [0, 2], sizes = [8, 2], strides = [1, 1]} : vector<8x4xf32> to vector<8x2xf32>
    %46 = vector.broadcast %2 : vector<1x2xf32> to vector<8x2xf32>
    %47 = arith.mulf %46, %0 : vector<8x2xf32>
    %48 = math.exp %44 : vector<8x2xf32>
    %49 = arith.mulf %0, %48 : vector<8x2xf32>
    %50 = arith.addf %49, %45 : vector<8x2xf32>
    %51 = vector.broadcast %4 : vector<1x2xf32> to vector<8x2xf32>
    %52 = arith.mulf %51, %50 : vector<8x2xf32>
    %53 = arith.addf %47, %52 : vector<8x2xf32>
    %54 = vector.extract_strided_slice %4 {offsets = [0, 0], sizes = [1, 1], strides = [1, 1]} : vector<1x2xf32> to vector<1x1xf32>
    %55 = vector.extract_strided_slice %44 {offsets = [0, 0], sizes = [8, 1], strides = [1, 1]} : vector<8x2xf32> to vector<8x1xf32>
    %56 = vector.broadcast %54 : vector<1x1xf32> to vector<8x1xf32>
    %57 = arith.mulf %56, %55 : vector<8x1xf32>
    %58 = arith.addf %1, %57 : vector<8x1xf32>
    %59 = vector.extract_strided_slice %4 {offsets = [0, 1], sizes = [1, 1], strides = [1, 1]} : vector<1x2xf32> to vector<1x1xf32>
    %60 = vector.extract_strided_slice %44 {offsets = [0, 1], sizes = [8, 1], strides = [1, 1]} : vector<8x2xf32> to vector<8x1xf32>
    %61 = vector.broadcast %59 : vector<1x1xf32> to vector<8x1xf32>
    %62 = arith.mulf %61, %60 : vector<8x1xf32>
    %63 = arith.addf %58, %62 : vector<8x1xf32>
    %c1 = arith.constant 1 : index
    %c0_26 = arith.constant 0 : index
    %64 = vector.load %arg2[%c1, %c0_26] : memref<4x2xf32, #tpu.memory_space<vmem>>, vector<1x2xf32>
    %cst_27 = arith.constant 1.000000e+00 : f32
    %65 = vector.broadcast %cst_27 : f32 to vector<1x2xf32>
    %66 = arith.subf %65, %64 : vector<1x2xf32>
    %67 = vector.broadcast %64 : vector<1x2xf32> to vector<8x2xf32>
    %68 = arith.mulf %53, %67 : vector<8x2xf32>
    %c1_28 = arith.constant 1 : index
    %c0_29 = arith.constant 0 : index
    %c0_30 = arith.constant 0 : index
    %69 = vector.load %arg3[%c1_28, %c0_29, %c0_30] : memref<4x2x64xf32, #tpu.memory_space<vmem>>, vector<1x2x64xf32>
    %70 = vector.shape_cast %69 : vector<1x2x64xf32> to vector<2x64xf32>
    %c1_31 = arith.constant 1 : index
    %c0_32 = arith.constant 0 : index
    %71 = vector.load %arg4[%c1_31, %c0_32] : memref<4x64xf32, #tpu.memory_space<vmem>>, vector<1x64xf32>
    %72 = vector.extract_strided_slice %68 {offsets = [0, 0], sizes = [8, 1], strides = [1, 1]} : vector<8x2xf32> to vector<8x1xf32>
    %73 = vector.extract_strided_slice %70 {offsets = [0, 0], sizes = [1, 64], strides = [1, 1]} : vector<2x64xf32> to vector<1x64xf32>
    %74 = vector.broadcast %72 : vector<8x1xf32> to vector<8x64xf32>
    %75 = vector.broadcast %73 : vector<1x64xf32> to vector<8x64xf32>
    %76 = arith.mulf %74, %75 : vector<8x64xf32>
    %77 = vector.broadcast %71 : vector<1x64xf32> to vector<8x64xf32>
    %78 = arith.addf %77, %76 : vector<8x64xf32>
    %79 = vector.extract_strided_slice %68 {offsets = [0, 1], sizes = [8, 1], strides = [1, 1]} : vector<8x2xf32> to vector<8x1xf32>
    %80 = vector.extract_strided_slice %70 {offsets = [1, 0], sizes = [1, 64], strides = [1, 1]} : vector<2x64xf32> to vector<1x64xf32>
    %81 = vector.broadcast %79 : vector<8x1xf32> to vector<8x64xf32>
    %82 = vector.broadcast %80 : vector<1x64xf32> to vector<8x64xf32>
    %83 = arith.mulf %81, %82 : vector<8x64xf32>
    %84 = arith.addf %78, %83 : vector<8x64xf32>
    %cst_33 = arith.constant 0.000000e+00 : f32
    %85 = vector.broadcast %cst_33 : f32 to vector<8x64xf32>
    %86 = arith.maximumf %84, %85 : vector<8x64xf32>
    %c1_34 = arith.constant 1 : index
    %c0_35 = arith.constant 0 : index
    %c0_36 = arith.constant 0 : index
    %87 = vector.load %arg5[%c1_34, %c0_35, %c0_36] : memref<4x64x64xf32, #tpu.memory_space<vmem>>, vector<1x64x64xf32>
    %88 = vector.shape_cast %87 : vector<1x64x64xf32> to vector<64x64xf32>
    %cst_37 = arith.constant dense<0.000000e+00> : vector<8x64xf32>
    %89 = tpu.matmul %86, %88, %cst_37 {dimension_numbers = #tpu.dot_dimension_numbers<[1], [0], [0], [1], [0, 0, 1, 1], [], []>} : vector<8x64xf32>, vector<64x64xf32>, vector<8x64xf32> -> vector<8x64xf32>
    %c1_38 = arith.constant 1 : index
    %c0_39 = arith.constant 0 : index
    %90 = vector.load %arg6[%c1_38, %c0_39] : memref<4x64xf32, #tpu.memory_space<vmem>>, vector<1x64xf32>
    %91 = vector.broadcast %90 : vector<1x64xf32> to vector<8x64xf32>
    %92 = arith.addf %89, %91 : vector<8x64xf32>
    %cst_40 = arith.constant 0.000000e+00 : f32
    %93 = vector.broadcast %cst_40 : f32 to vector<8x64xf32>
    %94 = arith.maximumf %92, %93 : vector<8x64xf32>
    %c1_41 = arith.constant 1 : index
    %c0_42 = arith.constant 0 : index
    %c0_43 = arith.constant 0 : index
    %95 = vector.load %arg7[%c1_41, %c0_42, %c0_43] : memref<4x64x4xf32, #tpu.memory_space<vmem>>, vector<1x64x4xf32>
    %96 = vector.shape_cast %95 : vector<1x64x4xf32> to vector<64x4xf32>
    %cst_44 = arith.constant dense<0.000000e+00> : vector<8x4xf32>
    %97 = tpu.matmul %94, %96, %cst_44 {dimension_numbers = #tpu.dot_dimension_numbers<[1], [0], [0], [1], [0, 0, 1, 1], [], []>} : vector<8x64xf32>, vector<64x4xf32>, vector<8x4xf32> -> vector<8x4xf32>
    %c1_45 = arith.constant 1 : index
    %c0_46 = arith.constant 0 : index
    %98 = vector.load %arg8[%c1_45, %c0_46] : memref<4x4xf32, #tpu.memory_space<vmem>>, vector<1x4xf32>
    %99 = vector.broadcast %98 : vector<1x4xf32> to vector<8x4xf32>
    %100 = arith.addf %97, %99 : vector<8x4xf32>
    %101 = vector.extract_strided_slice %100 {offsets = [0, 0], sizes = [8, 2], strides = [1, 1]} : vector<8x4xf32> to vector<8x2xf32>
    %cst_47 = arith.constant 0.000000e+00 : f32
    %102 = vector.broadcast %cst_47 : f32 to vector<8x2xf32>
    %103 = arith.maximumf %101, %102 : vector<8x2xf32>
    %c1_48 = arith.constant 1 : index
    %c0_49 = arith.constant 0 : index
    %104 = vector.load %arg9[%c1_48, %c0_49] : memref<4x2xf32, #tpu.memory_space<vmem>>, vector<1x2xf32>
    %105 = vector.broadcast %104 : vector<1x2xf32> to vector<8x2xf32>
    %106 = arith.mulf %103, %105 : vector<8x2xf32>
    %107 = vector.extract_strided_slice %100 {offsets = [0, 2], sizes = [8, 2], strides = [1, 1]} : vector<8x4xf32> to vector<8x2xf32>
    %108 = vector.broadcast %64 : vector<1x2xf32> to vector<8x2xf32>
    %109 = arith.mulf %108, %53 : vector<8x2xf32>
    %110 = math.exp %106 : vector<8x2xf32>
    %111 = arith.mulf %53, %110 : vector<8x2xf32>
    %112 = arith.addf %111, %107 : vector<8x2xf32>
    %113 = vector.broadcast %66 : vector<1x2xf32> to vector<8x2xf32>
    %114 = arith.mulf %113, %112 : vector<8x2xf32>
    %115 = arith.addf %109, %114 : vector<8x2xf32>
    %116 = vector.extract_strided_slice %66 {offsets = [0, 0], sizes = [1, 1], strides = [1, 1]} : vector<1x2xf32> to vector<1x1xf32>
    %117 = vector.extract_strided_slice %106 {offsets = [0, 0], sizes = [8, 1], strides = [1, 1]} : vector<8x2xf32> to vector<8x1xf32>
    %118 = vector.broadcast %116 : vector<1x1xf32> to vector<8x1xf32>
    %119 = arith.mulf %118, %117 : vector<8x1xf32>
    %120 = arith.addf %63, %119 : vector<8x1xf32>
    %121 = vector.extract_strided_slice %66 {offsets = [0, 1], sizes = [1, 1], strides = [1, 1]} : vector<1x2xf32> to vector<1x1xf32>
    %122 = vector.extract_strided_slice %106 {offsets = [0, 1], sizes = [8, 1], strides = [1, 1]} : vector<8x2xf32> to vector<8x1xf32>
    %123 = vector.broadcast %121 : vector<1x1xf32> to vector<8x1xf32>
    %124 = arith.mulf %123, %122 : vector<8x1xf32>
    %125 = arith.addf %120, %124 : vector<8x1xf32>
    %c2 = arith.constant 2 : index
    %c0_50 = arith.constant 0 : index
    %126 = vector.load %arg2[%c2, %c0_50] : memref<4x2xf32, #tpu.memory_space<vmem>>, vector<1x2xf32>
    %cst_51 = arith.constant 1.000000e+00 : f32
    %127 = vector.broadcast %cst_51 : f32 to vector<1x2xf32>
    %128 = arith.subf %127, %126 : vector<1x2xf32>
    %129 = vector.broadcast %126 : vector<1x2xf32> to vector<8x2xf32>
    %130 = arith.mulf %115, %129 : vector<8x2xf32>
    %c2_52 = arith.constant 2 : index
    %c0_53 = arith.constant 0 : index
    %c0_54 = arith.constant 0 : index
    %131 = vector.load %arg3[%c2_52, %c0_53, %c0_54] : memref<4x2x64xf32, #tpu.memory_space<vmem>>, vector<1x2x64xf32>
    %132 = vector.shape_cast %131 : vector<1x2x64xf32> to vector<2x64xf32>
    %c2_55 = arith.constant 2 : index
    %c0_56 = arith.constant 0 : index
    %133 = vector.load %arg4[%c2_55, %c0_56] : memref<4x64xf32, #tpu.memory_space<vmem>>, vector<1x64xf32>
    %134 = vector.extract_strided_slice %130 {offsets = [0, 0], sizes = [8, 1], strides = [1, 1]} : vector<8x2xf32> to vector<8x1xf32>
    %135 = vector.extract_strided_slice %132 {offsets = [0, 0], sizes = [1, 64], strides = [1, 1]} : vector<2x64xf32> to vector<1x64xf32>
    %136 = vector.broadcast %134 : vector<8x1xf32> to vector<8x64xf32>
    %137 = vector.broadcast %135 : vector<1x64xf32> to vector<8x64xf32>
    %138 = arith.mulf %136, %137 : vector<8x64xf32>
    %139 = vector.broadcast %133 : vector<1x64xf32> to vector<8x64xf32>
    %140 = arith.addf %139, %138 : vector<8x64xf32>
    %141 = vector.extract_strided_slice %130 {offsets = [0, 1], sizes = [8, 1], strides = [1, 1]} : vector<8x2xf32> to vector<8x1xf32>
    %142 = vector.extract_strided_slice %132 {offsets = [1, 0], sizes = [1, 64], strides = [1, 1]} : vector<2x64xf32> to vector<1x64xf32>
    %143 = vector.broadcast %141 : vector<8x1xf32> to vector<8x64xf32>
    %144 = vector.broadcast %142 : vector<1x64xf32> to vector<8x64xf32>
    %145 = arith.mulf %143, %144 : vector<8x64xf32>
    %146 = arith.addf %140, %145 : vector<8x64xf32>
    %cst_57 = arith.constant 0.000000e+00 : f32
    %147 = vector.broadcast %cst_57 : f32 to vector<8x64xf32>
    %148 = arith.maximumf %146, %147 : vector<8x64xf32>
    %c2_58 = arith.constant 2 : index
    %c0_59 = arith.constant 0 : index
    %c0_60 = arith.constant 0 : index
    %149 = vector.load %arg5[%c2_58, %c0_59, %c0_60] : memref<4x64x64xf32, #tpu.memory_space<vmem>>, vector<1x64x64xf32>
    %150 = vector.shape_cast %149 : vector<1x64x64xf32> to vector<64x64xf32>
    %cst_61 = arith.constant dense<0.000000e+00> : vector<8x64xf32>
    %151 = tpu.matmul %148, %150, %cst_61 {dimension_numbers = #tpu.dot_dimension_numbers<[1], [0], [0], [1], [0, 0, 1, 1], [], []>} : vector<8x64xf32>, vector<64x64xf32>, vector<8x64xf32> -> vector<8x64xf32>
    %c2_62 = arith.constant 2 : index
    %c0_63 = arith.constant 0 : index
    %152 = vector.load %arg6[%c2_62, %c0_63] : memref<4x64xf32, #tpu.memory_space<vmem>>, vector<1x64xf32>
    %153 = vector.broadcast %152 : vector<1x64xf32> to vector<8x64xf32>
    %154 = arith.addf %151, %153 : vector<8x64xf32>
    %cst_64 = arith.constant 0.000000e+00 : f32
    %155 = vector.broadcast %cst_64 : f32 to vector<8x64xf32>
    %156 = arith.maximumf %154, %155 : vector<8x64xf32>
    %c2_65 = arith.constant 2 : index
    %c0_66 = arith.constant 0 : index
    %c0_67 = arith.constant 0 : index
    %157 = vector.load %arg7[%c2_65, %c0_66, %c0_67] : memref<4x64x4xf32, #tpu.memory_space<vmem>>, vector<1x64x4xf32>
    %158 = vector.shape_cast %157 : vector<1x64x4xf32> to vector<64x4xf32>
    %cst_68 = arith.constant dense<0.000000e+00> : vector<8x4xf32>
    %159 = tpu.matmul %156, %158, %cst_68 {dimension_numbers = #tpu.dot_dimension_numbers<[1], [0], [0], [1], [0, 0, 1, 1], [], []>} : vector<8x64xf32>, vector<64x4xf32>, vector<8x4xf32> -> vector<8x4xf32>
    %c2_69 = arith.constant 2 : index
    %c0_70 = arith.constant 0 : index
    %160 = vector.load %arg8[%c2_69, %c0_70] : memref<4x4xf32, #tpu.memory_space<vmem>>, vector<1x4xf32>
    %161 = vector.broadcast %160 : vector<1x4xf32> to vector<8x4xf32>
    %162 = arith.addf %159, %161 : vector<8x4xf32>
    %163 = vector.extract_strided_slice %162 {offsets = [0, 0], sizes = [8, 2], strides = [1, 1]} : vector<8x4xf32> to vector<8x2xf32>
    %cst_71 = arith.constant 0.000000e+00 : f32
    %164 = vector.broadcast %cst_71 : f32 to vector<8x2xf32>
    %165 = arith.maximumf %163, %164 : vector<8x2xf32>
    %c2_72 = arith.constant 2 : index
    %c0_73 = arith.constant 0 : index
    %166 = vector.load %arg9[%c2_72, %c0_73] : memref<4x2xf32, #tpu.memory_space<vmem>>, vector<1x2xf32>
    %167 = vector.broadcast %166 : vector<1x2xf32> to vector<8x2xf32>
    %168 = arith.mulf %165, %167 : vector<8x2xf32>
    %169 = vector.extract_strided_slice %162 {offsets = [0, 2], sizes = [8, 2], strides = [1, 1]} : vector<8x4xf32> to vector<8x2xf32>
    %170 = vector.broadcast %126 : vector<1x2xf32> to vector<8x2xf32>
    %171 = arith.mulf %170, %115 : vector<8x2xf32>
    %172 = math.exp %168 : vector<8x2xf32>
    %173 = arith.mulf %115, %172 : vector<8x2xf32>
    %174 = arith.addf %173, %169 : vector<8x2xf32>
    %175 = vector.broadcast %128 : vector<1x2xf32> to vector<8x2xf32>
    %176 = arith.mulf %175, %174 : vector<8x2xf32>
    %177 = arith.addf %171, %176 : vector<8x2xf32>
    %178 = vector.extract_strided_slice %128 {offsets = [0, 0], sizes = [1, 1], strides = [1, 1]} : vector<1x2xf32> to vector<1x1xf32>
    %179 = vector.extract_strided_slice %168 {offsets = [0, 0], sizes = [8, 1], strides = [1, 1]} : vector<8x2xf32> to vector<8x1xf32>
    %180 = vector.broadcast %178 : vector<1x1xf32> to vector<8x1xf32>
    %181 = arith.mulf %180, %179 : vector<8x1xf32>
    %182 = arith.addf %125, %181 : vector<8x1xf32>
    %183 = vector.extract_strided_slice %128 {offsets = [0, 1], sizes = [1, 1], strides = [1, 1]} : vector<1x2xf32> to vector<1x1xf32>
    %184 = vector.extract_strided_slice %168 {offsets = [0, 1], sizes = [8, 1], strides = [1, 1]} : vector<8x2xf32> to vector<8x1xf32>
    %185 = vector.broadcast %183 : vector<1x1xf32> to vector<8x1xf32>
    %186 = arith.mulf %185, %184 : vector<8x1xf32>
    %187 = arith.addf %182, %186 : vector<8x1xf32>
    %c3 = arith.constant 3 : index
    %c0_74 = arith.constant 0 : index
    %188 = vector.load %arg2[%c3, %c0_74] : memref<4x2xf32, #tpu.memory_space<vmem>>, vector<1x2xf32>
    %cst_75 = arith.constant 1.000000e+00 : f32
    %189 = vector.broadcast %cst_75 : f32 to vector<1x2xf32>
    %190 = arith.subf %189, %188 : vector<1x2xf32>
    %191 = vector.broadcast %188 : vector<1x2xf32> to vector<8x2xf32>
    %192 = arith.mulf %177, %191 : vector<8x2xf32>
    %c3_76 = arith.constant 3 : index
    %c0_77 = arith.constant 0 : index
    %c0_78 = arith.constant 0 : index
    %193 = vector.load %arg3[%c3_76, %c0_77, %c0_78] : memref<4x2x64xf32, #tpu.memory_space<vmem>>, vector<1x2x64xf32>
    %194 = vector.shape_cast %193 : vector<1x2x64xf32> to vector<2x64xf32>
    %c3_79 = arith.constant 3 : index
    %c0_80 = arith.constant 0 : index
    %195 = vector.load %arg4[%c3_79, %c0_80] : memref<4x64xf32, #tpu.memory_space<vmem>>, vector<1x64xf32>
    %196 = vector.extract_strided_slice %192 {offsets = [0, 0], sizes = [8, 1], strides = [1, 1]} : vector<8x2xf32> to vector<8x1xf32>
    %197 = vector.extract_strided_slice %194 {offsets = [0, 0], sizes = [1, 64], strides = [1, 1]} : vector<2x64xf32> to vector<1x64xf32>
    %198 = vector.broadcast %196 : vector<8x1xf32> to vector<8x64xf32>
    %199 = vector.broadcast %197 : vector<1x64xf32> to vector<8x64xf32>
    %200 = arith.mulf %198, %199 : vector<8x64xf32>
    %201 = vector.broadcast %195 : vector<1x64xf32> to vector<8x64xf32>
    %202 = arith.addf %201, %200 : vector<8x64xf32>
    %203 = vector.extract_strided_slice %192 {offsets = [0, 1], sizes = [8, 1], strides = [1, 1]} : vector<8x2xf32> to vector<8x1xf32>
    %204 = vector.extract_strided_slice %194 {offsets = [1, 0], sizes = [1, 64], strides = [1, 1]} : vector<2x64xf32> to vector<1x64xf32>
    %205 = vector.broadcast %203 : vector<8x1xf32> to vector<8x64xf32>
    %206 = vector.broadcast %204 : vector<1x64xf32> to vector<8x64xf32>
    %207 = arith.mulf %205, %206 : vector<8x64xf32>
    %208 = arith.addf %202, %207 : vector<8x64xf32>
    %cst_81 = arith.constant 0.000000e+00 : f32
    %209 = vector.broadcast %cst_81 : f32 to vector<8x64xf32>
    %210 = arith.maximumf %208, %209 : vector<8x64xf32>
    %c3_82 = arith.constant 3 : index
    %c0_83 = arith.constant 0 : index
    %c0_84 = arith.constant 0 : index
    %211 = vector.load %arg5[%c3_82, %c0_83, %c0_84] : memref<4x64x64xf32, #tpu.memory_space<vmem>>, vector<1x64x64xf32>
    %212 = vector.shape_cast %211 : vector<1x64x64xf32> to vector<64x64xf32>
    %cst_85 = arith.constant dense<0.000000e+00> : vector<8x64xf32>
    %213 = tpu.matmul %210, %212, %cst_85 {dimension_numbers = #tpu.dot_dimension_numbers<[1], [0], [0], [1], [0, 0, 1, 1], [], []>} : vector<8x64xf32>, vector<64x64xf32>, vector<8x64xf32> -> vector<8x64xf32>
    %c3_86 = arith.constant 3 : index
    %c0_87 = arith.constant 0 : index
    %214 = vector.load %arg6[%c3_86, %c0_87] : memref<4x64xf32, #tpu.memory_space<vmem>>, vector<1x64xf32>
    %215 = vector.broadcast %214 : vector<1x64xf32> to vector<8x64xf32>
    %216 = arith.addf %213, %215 : vector<8x64xf32>
    %cst_88 = arith.constant 0.000000e+00 : f32
    %217 = vector.broadcast %cst_88 : f32 to vector<8x64xf32>
    %218 = arith.maximumf %216, %217 : vector<8x64xf32>
    %c3_89 = arith.constant 3 : index
    %c0_90 = arith.constant 0 : index
    %c0_91 = arith.constant 0 : index
    %219 = vector.load %arg7[%c3_89, %c0_90, %c0_91] : memref<4x64x4xf32, #tpu.memory_space<vmem>>, vector<1x64x4xf32>
    %220 = vector.shape_cast %219 : vector<1x64x4xf32> to vector<64x4xf32>
    %cst_92 = arith.constant dense<0.000000e+00> : vector<8x4xf32>
    %221 = tpu.matmul %218, %220, %cst_92 {dimension_numbers = #tpu.dot_dimension_numbers<[1], [0], [0], [1], [0, 0, 1, 1], [], []>} : vector<8x64xf32>, vector<64x4xf32>, vector<8x4xf32> -> vector<8x4xf32>
    %c3_93 = arith.constant 3 : index
    %c0_94 = arith.constant 0 : index
    %222 = vector.load %arg8[%c3_93, %c0_94] : memref<4x4xf32, #tpu.memory_space<vmem>>, vector<1x4xf32>
    %223 = vector.broadcast %222 : vector<1x4xf32> to vector<8x4xf32>
    %224 = arith.addf %221, %223 : vector<8x4xf32>
    %225 = vector.extract_strided_slice %224 {offsets = [0, 0], sizes = [8, 2], strides = [1, 1]} : vector<8x4xf32> to vector<8x2xf32>
    %cst_95 = arith.constant 0.000000e+00 : f32
    %226 = vector.broadcast %cst_95 : f32 to vector<8x2xf32>
    %227 = arith.maximumf %225, %226 : vector<8x2xf32>
    %c3_96 = arith.constant 3 : index
    %c0_97 = arith.constant 0 : index
    %228 = vector.load %arg9[%c3_96, %c0_97] : memref<4x2xf32, #tpu.memory_space<vmem>>, vector<1x2xf32>
    %229 = vector.broadcast %228 : vector<1x2xf32> to vector<8x2xf32>
    %230 = arith.mulf %227, %229 : vector<8x2xf32>
    %231 = vector.extract_strided_slice %224 {offsets = [0, 2], sizes = [8, 2], strides = [1, 1]} : vector<8x4xf32> to vector<8x2xf32>
    %232 = vector.broadcast %188 : vector<1x2xf32> to vector<8x2xf32>
    %233 = arith.mulf %232, %177 : vector<8x2xf32>
    %234 = math.exp %230 : vector<8x2xf32>
    %235 = arith.mulf %177, %234 : vector<8x2xf32>
    %236 = arith.addf %235, %231 : vector<8x2xf32>
    %237 = vector.broadcast %190 : vector<1x2xf32> to vector<8x2xf32>
    %238 = arith.mulf %237, %236 : vector<8x2xf32>
    %239 = arith.addf %233, %238 : vector<8x2xf32>
    %240 = vector.extract_strided_slice %190 {offsets = [0, 0], sizes = [1, 1], strides = [1, 1]} : vector<1x2xf32> to vector<1x1xf32>
    %241 = vector.extract_strided_slice %230 {offsets = [0, 0], sizes = [8, 1], strides = [1, 1]} : vector<8x2xf32> to vector<8x1xf32>
    %242 = vector.broadcast %240 : vector<1x1xf32> to vector<8x1xf32>
    %243 = arith.mulf %242, %241 : vector<8x1xf32>
    %244 = arith.addf %187, %243 : vector<8x1xf32>
    %245 = vector.extract_strided_slice %190 {offsets = [0, 1], sizes = [1, 1], strides = [1, 1]} : vector<1x2xf32> to vector<1x1xf32>
    %246 = vector.extract_strided_slice %230 {offsets = [0, 1], sizes = [8, 1], strides = [1, 1]} : vector<8x2xf32> to vector<8x1xf32>
    %247 = vector.broadcast %245 : vector<1x1xf32> to vector<8x1xf32>
    %248 = arith.mulf %247, %246 : vector<8x1xf32>
    %249 = arith.addf %244, %248 : vector<8x1xf32>
    %250 = math.tanh %239 : vector<8x2xf32>
    %251 = arith.mulf %250, %250 : vector<8x2xf32>
    %cst_98 = arith.constant 1.000000e+00 : f32
    %252 = vector.broadcast %cst_98 : f32 to vector<8x2xf32>
    %253 = arith.subf %252, %251 : vector<8x2xf32>
    %cst_99 = arith.constant 4.000000e+00 : f32
    %254 = vector.broadcast %cst_99 : f32 to vector<8x2xf32>
    %255 = arith.mulf %254, %253 : vector<8x2xf32>
    %256 = math.absf %255 : vector<8x2xf32>
    %257 = math.log %256 : vector<8x2xf32>
    %258 = vector.extract_strided_slice %257 {offsets = [0, 0], sizes = [8, 1], strides = [1, 1]} : vector<8x2xf32> to vector<8x1xf32>
    %259 = arith.addf %249, %258 : vector<8x1xf32>
    %260 = vector.extract_strided_slice %257 {offsets = [0, 1], sizes = [8, 1], strides = [1, 1]} : vector<8x2xf32> to vector<8x1xf32>
    %261 = arith.addf %259, %260 : vector<8x1xf32>
    %cst_100 = arith.constant 4.000000e+00 : f32
    %262 = vector.broadcast %cst_100 : f32 to vector<8x2xf32>
    %263 = arith.mulf %262, %250 : vector<8x2xf32>
    %cst_101 = arith.constant 0.000000e+00 : f32
    %264 = vector.broadcast %cst_101 : f32 to vector<8x125xf32>
    %265 = tpu.concatenate %263, %261, %264 in 1 : vector<8x2xf32>, vector<8x1xf32>, vector<8x125xf32> -> vector<8x128xf32>
    %c0_102 = arith.constant 0 : index
    %c0_103 = arith.constant 0 : index
    %266 = vector.load %arg10[%c0_102, %c0_103] : memref<8x128xf32, #tpu.memory_space<vmem>>, vector<8x128xf32>
    tpu.vector_store %arg10[%c0_102, %c0_103], %265 {strides = array<i32>} : memref<8x128xf32, #tpu.memory_space<vmem>>, vector<8x128xf32>,
    return
  }
  func.func @transform_0(%arg0: i32) -> (i32, i32) {
    %c0_i32 = arith.constant 0 : i32
    %c0_i32_0 = arith.constant 0 : i32
    return %arg0, %c0_i32 : i32, i32
  }
  func.func @transform_1(%arg0: i32) -> (i32, i32) {
    %c0_i32 = arith.constant 0 : i32
    %c0_i32_0 = arith.constant 0 : i32
    %c0_i32_1 = arith.constant 0 : i32
    return %c0_i32, %c0_i32_0 : i32, i32
  }
  func.func @transform_2(%arg0: i32) -> (i32, i32, i32) {
    %c0_i32 = arith.constant 0 : i32
    %c0_i32_0 = arith.constant 0 : i32
    %c0_i32_1 = arith.constant 0 : i32
    %c0_i32_2 = arith.constant 0 : i32
    return %c0_i32, %c0_i32_0, %c0_i32_1 : i32, i32, i32
  }
  func.func @transform_3(%arg0: i32) -> (i32, i32) {
    %c0_i32 = arith.constant 0 : i32
    %c0_i32_0 = arith.constant 0 : i32
    %c0_i32_1 = arith.constant 0 : i32
    return %c0_i32, %c0_i32_0 : i32, i32
  }
  func.func @transform_4(%arg0: i32) -> (i32, i32, i32) {
    %c0_i32 = arith.constant 0 : i32
    %c0_i32_0 = arith.constant 0 : i32
    %c0_i32_1 = arith.constant 0 : i32
    %c0_i32_2 = arith.constant 0 : i32
    return %c0_i32, %c0_i32_0, %c0_i32_1 : i32, i32, i32
  }
  func.func @transform_5(%arg0: i32) -> (i32, i32) {
    %c0_i32 = arith.constant 0 : i32
    %c0_i32_0 = arith.constant 0 : i32
    %c0_i32_1 = arith.constant 0 : i32
    return %c0_i32, %c0_i32_0 : i32, i32
  }
  func.func @transform_6(%arg0: i32) -> (i32, i32, i32) {
    %c0_i32 = arith.constant 0 : i32
    %c0_i32_0 = arith.constant 0 : i32
    %c0_i32_1 = arith.constant 0 : i32
    %c0_i32_2 = arith.constant 0 : i32
    return %c0_i32, %c0_i32_0, %c0_i32_1 : i32, i32, i32
  }
  func.func @transform_7(%arg0: i32) -> (i32, i32) {
    %c0_i32 = arith.constant 0 : i32
    %c0_i32_0 = arith.constant 0 : i32
    %c0_i32_1 = arith.constant 0 : i32
    return %c0_i32, %c0_i32_0 : i32, i32
  }
  func.func @transform_8(%arg0: i32) -> (i32, i32) {
    %c0_i32 = arith.constant 0 : i32
    %c0_i32_0 = arith.constant 0 : i32
    %c0_i32_1 = arith.constant 0 : i32
    return %c0_i32, %c0_i32_0 : i32, i32
  }
  func.func @transform_9(%arg0: i32) -> (i32, i32) {
    %c0_i32 = arith.constant 0 : i32
    %c0_i32_0 = arith.constant 0 : i32
    return %arg0, %c0_i32 : i32, i32
  }
}

</mosaic_0001>

<bundles_post_ra>
// kernel: tpu_custom_call.1
= control target key start
LH: loop header
LB: loop body
LE: loop exit
PB: predicated region body
PF: predicated region fallthrough
CT: control target
= control target key end

     0   :  { %v36_v0 = vlaneseq  ;;  %v1473_v1 = vmov 0   ;;  %v1474_v2 = vmov 0.0|0.0   ;;  %s1980_s0 = inlined_call_operand.vmem [shape: f32[8,2], index: 0, kind: input, shape index: {}]   ;;  %s1981_s1 = inlined_call_operand.vmem [shape: f32[4,2], index: 1, kind: input, shape index: {}]   ;;  %s1982_s2 = inlined_call_operand.vmem [shape: f32[4,2,64], index: 2, kind: input, shape index: {}]   ;;  %s1983_s3 = inlined_call_operand.vmem [shape: f32[4,64], index: 3, kind: input, shape index: {}]   ;;  %s1984_s4 = inlined_call_operand.vmem [shape: f32[4,64,64], index: 4, kind: input, shape index: {}]   ;;  %s1985_s5 = inlined_call_operand.vmem [shape: f32[4,64], index: 5, kind: input, shape index: {}]   ;;  %s1986_s6 = inlined_call_operand.vmem [shape: f32[4,64,4], index: 6, kind: input, shape index: {}]   ;;  %s1987_s7 = inlined_call_operand.vmem [shape: f32[4,4], index: 7, kind: input, shape index: {}]   ;;  %s1988_s8 = inlined_call_operand.vmem [shape: f32[4,2], index: 8, kind: input, shape index: {}]   ;;  %s1989_s9 = inlined_call_operand.hbm [shape: f32[8,128], index: 9, kind: output, shape index: {}]  }
   0x1   :  { %1429 = vset.pattern.permute.xlu0 %v1473_v1  ;;  %1324 = vmatprep.subr.bf16.mxu0 %v1474_v2  ;;  %v69_v3 = vld [vmem:[%s1984_s4] sm:$0xff]  ;;  %v70_v4 = vld [vmem:[%s1984_s4 + $0x8] sm:$0xff] }
   0x2   :  { %v37_v5 = vshrl.u32 %v36_v0, 7  ;;  %v1325_v6 = vpack.c.bf16 %v70_v4, %v69_v3  ;;  %1336 = vmatprep.subr.bf16.mxu1 %v1474_v2  ;;  %1431 = vset.pattern.permute.xlu1 %v1473_v1 }
   0x3   :  { %14 = vsyncpa [#allocation3], 0  ;;  %v1545_v7 = vld [vmem:[%s1981_s1] sm:$0x1]  ;;  %v71_v11 = vld [vmem:[%s1984_s4 + $0x10] sm:$0xff]  ;;  %v1475_v18 = vmov 1  }
   0x4   :  { %v1547_v8 = vsub.s32 0, %v37_v5  ;;  %1326 = vmatpush3.bf16.msra.mxu0 %v1325_v6  ;;  %v1552_v9 = vld [vmem:[%s1980_s0] sm:$0xff]  ;;  %v72_v12 = vld [vmem:[%s1984_s4 + $0x18] sm:$0xff]  ;;  %v74_v16 = vld [vmem:[%s1984_s4 + $0x28] sm:$0xff]  ;;  %vm1476_vm0 = vmmov 0   ;;  %v1477_v22 = vmov 0.0  }
   0x5   :  { %1327 = vmatprep.subr.bf16.mxu0 %v1474_v2  ;;  %v1328_v14 = vpack.c.bf16 %v72_v12, %v71_v11  ;;  %v73_v15 = vld [vmem:[%s1984_s4 + $0x20] sm:$0xff]  ;;  %v75_v19 = vld [vmem:[%s1984_s4 + $0x30] sm:$0xff]  ;;  %v76_v20 = vld [vmem:[%s1984_s4 + $0x38] sm:$0xff]  ;;  %1188 = vmatprep.mubr.msk.f32.mxu0 %vm1476_vm0, %v1477_v22  ;;  %v1613_v34 = vsub.s32 1, %v37_v5  ;;  %vm82_vm1 = vcmask 523264   ;;  %s1478_s30 = smov 126  }
   0x6   :  { %v39_v10 = vrot.slane %v1545_v7, %v1547_v8  ;;  %v1331_v17 = vpack.c.bf16 %v74_v16, %v73_v15  ;;  %v1334_v21 = vpack.c.bf16 %v76_v20, %v75_v19  ;;  %1207 = vmatprep.mubr.msk.f32.mxu1 %vm1476_vm0, %v1477_v22  ;;  %v157_v23 = vld [vmem:[%s1986_s6] sm:$0xff]  ;;  %v158_v24 = vld [vmem:[%s1986_s6 + $0x8] sm:$0xff]  ;;  %v159_v25 = vld [vmem:[%s1986_s6 + $0x10] sm:$0xff]  ;;  %v35_v0 = vsub.f32 1.0, %v1545_v7  ;;  %s1479_s12 = smov 127  }
   0x7   :  { %v1337_v26 = vpack.c.bf16 %v158_v24, %v157_v23  ;;  %v160_v27 = vld [vmem:[%s1986_s6 + $0x18] sm:$0xff]  ;;  %v161_v29 = vld [vmem:[%s1986_s6 + $0x20] sm:$0xff]  ;;  %v162_v30 = vld [vmem:[%s1986_s6 + $0x28] sm:$0xff]  ;;  %vm1006_vm2 = vcmask 15360   ;;  %vm1008_vm3 = vcmask 23552  }
   0x8   :  { %v1564_v13 = vmul.f32 %v39_v10, %v1552_v9  ;;  %1329 = vmatpush3.bf16.msra.mxu0 %v1328_v14  ;;  %v1340_v28 = vpack.c.bf16 %v160_v27, %v159_v25  ;;  %v1343_v31 = vpack.c.bf16 %v162_v30, %v161_v29  ;;  %v41_v32 = vld [vmem:[%s1982_s2] sm:$0x3]  ;;  %v163_v44 = vld [vmem:[%s1986_s6 + $0x30] sm:$0xff]  ;;  %v164_v45 = vld [vmem:[%s1986_s6 + $0x38] sm:$0xff]  ;;  %v1660_v6 = vrot.slane %v35_v0, %v1547_v8 }
   0x9   :  { %1330 = vmatprep.subr.bf16.mxu0 %v1474_v2  ;;  %1338 = vmatpush3.bf16.msra.mxu1 %v1337_v26  ;;  %v51_v33 = vrot.slane %v41_v32, %v1547_v8  ;;  %v65_v37 = vrot.slane %v41_v32, %v1613_v34  ;;  %v1025_v38 = vld [vmem:[%s1983_s3] ss:$0 sm:$0xff]  ;;  %v1346_v46 = vpack.c.bf16 %v164_v45, %v163_v44  ;;  %v1034_v57 = vld [vmem:[%s1984_s4 + $0x48] sm:$0xff]  ;;  %v1657_v5 = vld [vmem:[%s1981_s1 + $0x1] sm:$0x1] }
   0xa   :  { %45 = vperm.xlu0 %1429, %v1564_v13   ;;  %1339 = vmatprep.subr.bf16.mxu1 %v1474_v2  ;;  %v1026_v47 = vld [vmem:[%s1985_s5] ss:$0 sm:$0xff]  ;;  %v276_v12 = vrot.slane %v1657_v5, %v1547_v8  ;;  %v1035_v7 = vld [vmem:[%s1984_s4 + $0x50] sm:$0xff]  ;;  %v1044_v25 = vld [vmem:[%s1986_s6 + $0x48] sm:$0xff] }
   0xb   :  { %v1028_v52 = vld [vmem:[%s1987_s7] ss:$0 sm:$0xff]  ;;  %v1039_v20 = vld [vmem:[%s1984_s4 + $0x70] sm:$0xff] }
   0xc   :  { %1332 = vmatpush3.bf16.msra.mxu0 %v1331_v17  ;;  %v1033_v56 = vld [vmem:[%s1984_s4 + $0x40] sm:$0xff]  ;;  %v1038_v17 = vld [vmem:[%s1984_s4 + $0x68] sm:$0xff]  ;;  %v1045_v26 = vld [vmem:[%s1986_s6 + $0x50] sm:$0xff] }
   0xd   :  { %1333 = vmatprep.subr.bf16.mxu0 %v1474_v2  ;;  %1341 = vmatpush3.bf16.msra.mxu1 %v1340_v28  ;;  %v1349_v58 = vpack.c.bf16 %v1034_v57, %v1033_v56  ;;  %v1030_v60 = vld [vmem:[%s1988_s8] ss:$0 sm:$0xff]  ;;  %v1046_v28 = vld [vmem:[%s1986_s6 + $0x58] sm:$0xff]  ;;  %v1049_v45 = vld [vmem:[%s1986_s6 + $0x70] sm:$0xff] }
   0xe   :  { %1430 = vset.pattern.permute.xlu0 %v1475_v18  ;;  %1342 = vmatprep.subr.bf16.mxu1 %v1474_v2  ;;  %v1043_v24 = vld [vmem:[%s1986_s6 + $0x40] sm:$0xff]  ;;  %v1364_v29 = vpack.c.bf16 %v1046_v28, %v1045_v26  ;;  %v1058_v56 = vld [vmem:[%s1984_s4 + $0x90] sm:$0xff]  ;;  %v1067_v28 = vld [vmem:[%s1986_s6 + $0x88] sm:$0xff] }
   0xf   :  { %59 = vperm.xlu0 %1430, %v1564_v13   ;;  %v1361_v27 = vpack.c.bf16 %v1044_v25, %v1043_v24  ;;  %v1047_v30 = vld [vmem:[%s1986_s6 + $0x60] sm:$0xff]  ;;  %v1063_v25 = vld [vmem:[%s1984_s4 + $0xb8] sm:$0xff] }
  0x10   :  { %1335 = vmatpush3.bf16.msra.mxu0 %v1334_v21  ;;  %v1040_v21 = vld [vmem:[%s1984_s4 + $0x78] sm:$0xff] }
  0x11   :  { %1348 = vmatprep.subr.bf16.mxu0 %v1474_v2  ;;  %1344 = vmatpush3.bf16.msra.mxu1 %v1343_v31  ;;  %v1358_v23 = vpack.c.bf16 %v1040_v21, %v1039_v20  ;;  %v1048_v31 = vld [vmem:[%s1986_s6 + $0x68] sm:$0xff] }
  0x12   :  { %1345 = vmatprep.subr.bf16.mxu1 %v1474_v2  ;;  %v1367_v32 = vpack.c.bf16 %v1048_v31, %v1047_v30 }
  0x15   :  { %1347 = vmatpush3.bf16.msra.mxu1 %v1346_v46  ;;  %v1050_v46 = vld [vmem:[%s1986_s6 + $0x78] sm:$0xff] }
  0x16   :  { %1360 = vmatprep.subr.bf16.mxu1 %v1474_v2 }
  0x89   :  { %v46_v35 = vpop.permute.xlu0 %45 }
  0x8a   :  { %v52_v36 = vmul.f32 %v51_v33, %v46_v35  ;;  %v1031_v33 = vld [vmem:[%s1982_s2 + $0x2] sm:$0x3] }
  0x8b   :  { %v289_v35 = vrot.slane %v1031_v33, %v1547_v8 }
  0x8c   :  { %v57_v40 = vadd.f32 %v1025_v38, %v52_v36  ;;  %v303_v38 = vrot.slane %v1031_v33, %v1613_v34  ;;  %v1071_v33 = vld [vmem:[%s1986_s6 + $0xa8] sm:$0xff] }
  0x8e   :  { %v60_v39 = vpop.permute.xlu0 %59 }
  0x8f   :  { %v66_v41 = vmul.f32 %v65_v37, %v60_v39  ;;  %v1032_v39 = vld [vmem:[%s1983_s3 + $0x1] ss:$0 sm:$0xff] }
  0x91   :  { %v67_v42 = vadd.f32 %v66_v41, %v57_v40 }
  0x93   :  { %v68_v43 = vmax.f32 %v67_v42, 0.0 }
  0x95   :  { %1189 = vmatmul.mubr.msk.f32.vlgmr.msra.gmra.mrb[0].mxu0 %vm82_vm1, %v68_v43 }
  0x96   :  { %1226 = vmatprep.mubr.msk.f32.mxu0 %vm1476_vm0, %v1477_v22  ;;  %1350 = vmatpush3.bf16.msra.mxu0 %v1349_v58  ;;  %v1059_v58 = vld [vmem:[%s1984_s4 + $0x98] sm:$0xff] }
  0x97   :  { %1351 = vmatprep.subr.bf16.mxu0 %v1474_v2 }
 0x168   :  { %v152_v48 = vpop.f32.mrb[0].mxu0 }
 0x169   :  { %v153_v49 = vadd.f32 %v1026_v47, %v152_v48  ;;  %v1190_v50 = vpop.f32.mrb[1].mxu0  ;;  %v1370_v47 = vpack.c.bf16 %v1050_v46, %v1049_v45  ;;  %v1041_v48 = vld [vmem:[%s1985_s5 + $0x1] ss:$0 sm:$0xff] }
 0x16b   :  { %v156_v51 = vmax.f32 %v153_v49, 0.0 }
 0x16d   :  { %1208 = vmatmul.mubr.msk.f32.vlgmr.msra.gmra.mrb[0].mxu1 %vm82_vm1, %v156_v51 }
 0x16e   :  { %1245 = vmatprep.mubr.msk.f32.mxu1 %vm1476_vm0, %v1477_v22  ;;  %1362 = vmatpush3.bf16.msra.mxu1 %v1361_v27  ;;  %v1066_v27 = vld [vmem:[%s1986_s6 + $0x80] sm:$0xff] }
 0x16f   :  { %1363 = vmatprep.subr.bf16.mxu1 %v1474_v2  ;;  %v1385_v30 = vpack.c.bf16 %v1067_v28, %v1066_v27  ;;  %v1085_v28 = vld [vmem:[%s1984_s4 + $0xf0] sm:$0xff] }
 0x172   :  { %1365 = vmatpush3.bf16.msra.mxu1 %v1364_v29  ;;  %v1068_v29 = vld [vmem:[%s1986_s6 + $0x90] sm:$0xff] }
 0x173   :  { %1366 = vmatprep.subr.bf16.mxu1 %v1474_v2 }
 0x176   :  { %1368 = vmatpush3.bf16.msra.mxu1 %v1367_v32  ;;  %v1070_v32 = vld [vmem:[%s1986_s6 + $0xa0] sm:$0xff] }
 0x177   :  { %1369 = vmatprep.subr.bf16.mxu1 %v1474_v2 }
 0x17a   :  { %1371 = vmatpush3.bf16.msra.mxu1 %v1370_v47  ;;  %v1072_v47 = vld [vmem:[%s1986_s6 + $0xb0] sm:$0xff] }
 0x17b   :  { %1384 = vmatprep.subr.bf16.mxu1 %v1474_v2 }
 0x240   :  { %v239_v53 = vpop.f32.mrb[0].mxu1 }
 0x241   :  { %v240_v54 = vadd.f32 %v1028_v52, %v239_v53  ;;  %v1209_v55 = vpop.f32.mrb[1].mxu1  ;;  %v1051_v53 = vld [vmem:[%s1987_s7 + $0x1] ss:$0 sm:$0xff] }
 0x242   :  { %v1057_v55 = vld [vmem:[%s1984_s4 + $0x88] sm:$0xff] }
 0x243   :  { %254 = vrot.lane.b32.xlu1 %v240_v54, %s1478_s30  ;;  %v243_v59 = vmax.f32 %v240_v54, 0.0  ;;  %v1056_v54 = vld [vmem:[%s1984_s4 + $0x80] sm:$0xff] }
 0x244   :  { %v1373_v57 = vpack.c.bf16 %v1057_v55, %v1056_v54  ;;  %v1074_v55 = vld [vmem:[%s1987_s7 + $0x2] ss:$0 sm:$0xff] }
 0x245   :  { %v1649_v61 = vmul.f32 %v1030_v60, %v243_v59 }
 0x247   :  { %v250_v62 = vmul.f32 1.442695, %v1649_v61 }
 0x249   :  { %1437 = vpow2.f32 %v250_v62 }
 0x253   :  { %v1438_v63 = vpop.eup %1437 }
 0x254   :  { %v252_v3 = vmul.f32 %v1438_v63, %v1552_v9  ;;  %v1036_v9 = vld [vmem:[%s1984_s4 + $0x58] sm:$0xff]  ;;  %v1376_v63 = vpack.c.bf16 %v1059_v58, %v1058_v56 }
 0x255   :  { %v1352_v16 = vpack.c.bf16 %v1036_v9, %v1035_v7 }
 0x257   :  { %1353 = vmatpush3.bf16.msra.mxu0 %v1352_v16  ;;  %v1770_v16 = vld [vmem:[%s1981_s1 + $0x2] sm:$0x1] }
 0x258   :  { %1354 = vmatprep.subr.bf16.mxu0 %v1474_v2  ;;  %v515_v20 = vrot.slane %v1770_v16, %v1547_v8 }
 0x2b5   :  { %v255_v4 = vpop.permute.xlu1 %254 }
 0x2b6   :  { %v257_v10 = vadd.f32 %v255_v4, %v252_v3  ;;  %v1053_v3 = vld [vmem:[%s1988_s8 + $0x1] ss:$0 sm:$0xff] }
 0x2b8   :  { %v262_v11 = vmul.f32 %v1660_v6, %v257_v10 }
 0x2ba   :  { %v1666_v14 = vadd.f32 %v262_v11, %v1564_v13  ;;  %v1037_v13 = vld [vmem:[%s1984_s4 + $0x60] sm:$0xff] }
 0x2bb   :  { %v1355_v19 = vpack.c.bf16 %v1038_v17, %v1037_v13 }
 0x2bc   :  { %v1675_v15 = vmul.f32 %v276_v12, %v1666_v14  ;;  %v272_v12 = vsub.f32 1.0, %v1657_v5 }
 0x2bd   :  { %1356 = vmatpush3.bf16.msra.mxu0 %v1355_v19 }
 0x2be   :  { %283 = vperm.xlu1 %1431, %v1675_v15   ;;  %1357 = vmatprep.subr.bf16.mxu0 %v1474_v2  ;;  %v1773_v13 = vrot.slane %v272_v12, %v1547_v8 }
 0x2c1   :  { %1359 = vmatpush3.bf16.msra.mxu0 %v1358_v23  ;;  %v1061_v23 = vld [vmem:[%s1984_s4 + $0xa8] sm:$0xff] }
 0x2c2   :  { %1432 = vset.pattern.permute.xlu1 %v1475_v18  ;;  %1372 = vmatprep.subr.bf16.mxu0 %v1474_v2 }
 0x2c3   :  { %297 = vperm.xlu1 %1432, %v1675_v15  }
 0x2c7   :  { %1433 = vset.pattern.permute.xlu1 %v1473_v1 }
 0x33d   :  { %v284_v36 = vpop.permute.xlu1 %283 }
 0x33e   :  { %v290_v37 = vmul.f32 %v289_v35, %v284_v36  ;;  %v1391_v35 = vpack.c.bf16 %v1071_v33, %v1070_v32  ;;  %v1054_v36 = vld [vmem:[%s1982_s2 + $0x4] sm:$0x3] }
 0x340   :  { %v295_v41 = vadd.f32 %v1032_v39, %v290_v37  ;;  %v528_v37 = vrot.slane %v1054_v36, %v1547_v8 }
 0x342   :  { %v298_v40 = vpop.permute.xlu1 %297 }
 0x343   :  { %v304_v42 = vmul.f32 %v303_v38, %v298_v40  ;;  %v542_v38 = vrot.slane %v1054_v36, %v1613_v34  ;;  %v1055_v40 = vld [vmem:[%s1983_s3 + $0x2] ss:$0 sm:$0xff]  ;;  %v1094_v36 = vld [vmem:[%s1986_s6 + $0xe8] sm:$0xff] }
 0x345   :  { %v305_v43 = vadd.f32 %v304_v42, %v295_v41 }
 0x347   :  { %v306_v44 = vmax.f32 %v305_v43, 0.0 }
 0x349   :  { %1227 = vmatmul.mubr.msk.f32.vlgmr.msra.gmra.mrb[2].mxu0 %vm82_vm1, %v306_v44 }
 0x34a   :  { %1264 = vmatprep.mubr.msk.f32.mxu0 %vm1476_vm0, %v1477_v22  ;;  %1374 = vmatpush3.bf16.msra.mxu0 %v1373_v57 }
 0x34b   :  { %1375 = vmatprep.subr.bf16.mxu0 %v1474_v2 }
 0x34e   :  { %1377 = vmatpush3.bf16.msra.mxu0 %v1376_v63  ;;  %v1082_v63 = vld [vmem:[%s1984_s4 + $0xd8] sm:$0xff] }
 0x34f   :  { %1378 = vmatprep.subr.bf16.mxu0 %v1474_v2 }
 0x41c   :  { %v390_v49 = vpop.f32.mrb[2].mxu0 }
 0x41d   :  { %v391_v50 = vadd.f32 %v1041_v48, %v390_v49  ;;  %v1228_v51 = vpop.f32.mrb[3].mxu0  ;;  %v1073_v48 = vld [vmem:[%s1986_s6 + $0xb8] sm:$0xff] }
 0x41e   :  { %v1394_v49 = vpack.c.bf16 %v1073_v48, %v1072_v47 }
 0x41f   :  { %v394_v52 = vmax.f32 %v391_v50, 0.0  ;;  %v1064_v50 = vld [vmem:[%s1985_s5 + $0x2] ss:$0 sm:$0xff] }
 0x421   :  { %1246 = vmatmul.mubr.msk.f32.vlgmr.msra.gmra.mrb[2].mxu1 %vm82_vm1, %v394_v52 }
 0x422   :  { %1283 = vmatprep.mubr.msk.f32.mxu1 %vm1476_vm0, %v1477_v22  ;;  %1386 = vmatpush3.bf16.msra.mxu1 %v1385_v30 }
 0x423   :  { %1387 = vmatprep.subr.bf16.mxu1 %v1474_v2 }
 0x4f4   :  { %v478_v59 = vpop.f32.mrb[2].mxu1 }
 0x4f5   :  { %v479_v60 = vadd.f32 %v1051_v53, %v478_v59  ;;  %v1247_v62 = vpop.f32.mrb[3].mxu1  ;;  %v1079_v59 = vld [vmem:[%s1984_s4 + $0xc0] sm:$0xff] }
 0x4f7   :  { %493 = vrot.lane.b32.xlu0 %v479_v60, %s1478_s30  ;;  %v482_v0 = vmax.f32 %v479_v60, 0.0  ;;  %v1080_v60 = vld [vmem:[%s1984_s4 + $0xc8] sm:$0xff] }
 0x4f8   :  { %v1397_v62 = vpack.c.bf16 %v1080_v60, %v1079_v59  ;;  %v1099_v60 = vld [vmem:[%s1988_s8 + $0x3] ss:$0 sm:$0xff] }
 0x4f9   :  { %v1762_v4 = vmul.f32 %v1053_v3, %v482_v0 }
 0x4fb   :  { %v489_v10 = vmul.f32 1.442695, %v1762_v4 }
 0x4fd   :  { %1439 = vpow2.f32 %v489_v10  ;;  %v1076_v10 = vld [vmem:[%s1988_s8 + $0x2] ss:$0 sm:$0xff] }
 0x507   :  { %v1440_v11 = vpop.eup %1439 }
 0x508   :  { %v491_v7 = vmul.f32 %v1440_v11, %v1666_v14  ;;  %v1060_v14 = vld [vmem:[%s1984_s4 + $0xa0] sm:$0xff] }
 0x509   :  { %v1379_v24 = vpack.c.bf16 %v1061_v23, %v1060_v14 }
 0x50b   :  { %1380 = vmatpush3.bf16.msra.mxu0 %v1379_v24 }
 0x50c   :  { %1381 = vmatprep.subr.bf16.mxu0 %v1474_v2 }
 0x569   :  { %v494_v9 = vpop.permute.xlu0 %493 }
 0x56a   :  { %v496_v17 = vadd.f32 %v494_v9, %v491_v7  ;;  %v511_v9 = vsub.f32 1.0, %v1770_v16 }
 0x56c   :  { %v501_v19 = vmul.f32 %v1773_v13, %v496_v17  ;;  %v739_v14 = vrot.slane %v511_v9, %v1547_v8 }
 0x56e   :  { %v1779_v21 = vadd.f32 %v501_v19, %v1675_v15  ;;  %v1062_v15 = vld [vmem:[%s1984_s4 + $0xb0] sm:$0xff] }
 0x56f   :  { %v1382_v26 = vpack.c.bf16 %v1063_v25, %v1062_v15 }
 0x570   :  { %v1782_v5 = vmul.f32 %v515_v20, %v1779_v21  ;;  %v1873_v20 = vld [vmem:[%s1981_s1 + $0x3] sm:$0x1] }
 0x571   :  { %1383 = vmatpush3.bf16.msra.mxu0 %v1382_v26  ;;  %v754_v15 = vrot.slane %v1873_v20, %v1547_v8  ;;  %v1084_v26 = vld [vmem:[%s1984_s4 + $0xe8] sm:$0xff]  ;;  %v750_v59 = vsub.f32 1.0, %v1873_v20 }
 0x572   :  { %536 = vperm.xlu0 %1430, %v1782_v5   ;;  %522 = vperm.xlu1 %1433, %v1782_v5  }
 0x573   :  { %1396 = vmatprep.subr.bf16.mxu0 %v1474_v2 }
 0x576   :  { %1434 = vset.pattern.permute.xlu0 %v1473_v1  ;;  %1435 = vset.pattern.permute.xlu1 %v1475_v18  ;;  %v1069_v1 = vld [vmem:[%s1986_s6 + $0x98] sm:$0xff] }
 0x577   :  { %v1388_v31 = vpack.c.bf16 %v1069_v1, %v1068_v29  ;;  %v1086_v29 = vld [vmem:[%s1984_s4 + $0xf8] sm:$0xff]  ;;  %v1090_v1 = vld [vmem:[%s1986_s6 + $0xc8] sm:$0xff] }
 0x578   :  { %v1406_v30 = vpack.c.bf16 %v1086_v29, %v1085_v28 }
 0x579   :  { %1389 = vmatpush3.bf16.msra.mxu1 %v1388_v31  ;;  %v1091_v31 = vld [vmem:[%s1986_s6 + $0xd0] sm:$0xff] }
 0x57a   :  { %1390 = vmatprep.subr.bf16.mxu1 %v1474_v2 }
 0x57d   :  { %1392 = vmatpush3.bf16.msra.mxu1 %v1391_v35  ;;  %v1093_v35 = vld [vmem:[%s1986_s6 + $0xe0] sm:$0xff] }
 0x57e   :  { %1393 = vmatprep.subr.bf16.mxu1 %v1474_v2 }
 0x581   :  { %1395 = vmatpush3.bf16.msra.mxu1 %v1394_v49 }
 0x582   :  { %1408 = vmatprep.subr.bf16.mxu1 %v1474_v2 }
 0x5f1   :  { %v537_v39 = vpop.permute.xlu0 %536  ;;  %v523_v41 = vpop.permute.xlu1 %522 }
 0x5f2   :  { %v529_v42 = vmul.f32 %v528_v37, %v523_v41  ;;  %v543_v43 = vmul.f32 %v542_v38, %v537_v39  ;;  %v1415_v37 = vpack.c.bf16 %v1094_v36, %v1093_v35  ;;  %v1077_v38 = vld [vmem:[%s1982_s2 + $0x6] sm:$0x3] }
 0x5f3   :  { %v767_v39 = vrot.slane %v1077_v38, %v1547_v8 }
 0x5f4   :  { %v534_v44 = vadd.f32 %v1055_v40, %v529_v42  ;;  %v781_v40 = vrot.slane %v1077_v38, %v1613_v34  ;;  %v1078_v42 = vld [vmem:[%s1983_s3 + $0x3] ss:$0 sm:$0xff]  ;;  %v1096_v34 = vld [vmem:[%s1986_s6 + $0xf8] sm:$0xff] }
 0x5f6   :  { %v544_v45 = vadd.f32 %v543_v43, %v534_v44 }
 0x5f8   :  { %v545_v46 = vmax.f32 %v544_v45, 0.0 }
 0x5fa   :  { %1265 = vmatmul.mubr.msk.f32.vlgmr.msra.gmra.mrb[4].mxu0 %vm82_vm1, %v545_v46 }
 0x5fb   :  { %1302 = vmatprep.mubr.msk.f32.mxu0 %vm1476_vm0, %v1477_v22  ;;  %1398 = vmatpush3.bf16.msra.mxu0 %v1397_v62 }
 0x5fc   :  { %1399 = vmatprep.subr.bf16.mxu0 %v1474_v2 }
 0x6cd   :  { %v629_v51 = vpop.f32.mrb[4].mxu0 }
 0x6ce   :  { %v630_v52 = vadd.f32 %v1064_v50, %v629_v51  ;;  %v1266_v53 = vpop.f32.mrb[5].mxu0  ;;  %v1087_v50 = vld [vmem:[%s1985_s5 + $0x3] ss:$0 sm:$0xff]  ;;  %s1480_s5 = smov 2  }
 0x6d0   :  { %v633_v54 = vmax.f32 %v630_v52, 0.0 }
 0x6d2   :  { %1284 = vmatmul.mubr.msk.f32.vlgmr.msra.gmra.mrb[4].mxu1 %vm82_vm1, %v633_v54 }
 0x6d3   :  { %1321 = vmatprep.mubr.msk.f32.mxu1 %vm1476_vm0, %v1477_v22  ;;  %v1081_v22 = vld [vmem:[%s1984_s4 + $0xd0] sm:$0xff] }
 0x6d4   :  { %v1400_v0 = vpack.c.bf16 %v1082_v63, %v1081_v22  ;;  %v503_v63 = vmul.f32 %v1773_v13, %v1762_v4 }
 0x6d6   :  { %1401 = vmatpush3.bf16.msra.mxu0 %v1400_v0  ;;  %v978_v0 = vrot.slane %v750_v59, %v1547_v8 }
 0x6d7   :  { %1402 = vmatprep.subr.bf16.mxu0 %v1474_v2 }
 0x7a5   :  { %v717_v56 = vpop.f32.mrb[4].mxu1 }
 0x7a6   :  { %v718_v57 = vadd.f32 %v1074_v55, %v717_v56  ;;  %v1285_v58 = vpop.f32.mrb[5].mxu1  ;;  %v1097_v55 = vld [vmem:[%s1987_s7 + $0x3] ss:$0 sm:$0xff]  ;;  %s1481_s7 = smov [#allocation2]  }
 0x7a7   :  { %s1017_s8 = sshll.u32 %s1481_s7, 4  ;;  %s1018_s8 = int_to_ptr.vmem [resolvable:$true] %s1017_s8 }
 0x7a8   :  { %732 = vrot.lane.b32.xlu1 %v718_v57, %s1478_s30  ;;  %v721_v3 = vmax.f32 %v718_v57, 0.0  ;;  %p1454_p1 = scmp.lt.s32.totalorder %s1018_s8, %s1018_s8 }
 0x7aa   :  { %v727_v11 = vmul.f32 %v1076_v10, %v721_v3 }
 0x7ac   :  { %v728_v12 = vmul.f32 1.442695, %v727_v11 }
 0x7ae   :  { %1441 = vpow2.f32 %v728_v12 }
 0x7b8   :  { %v1442_v7 = vpop.eup %1441 }
 0x7b9   :  { %v730_v17 = vmul.f32 %v1442_v7, %v1779_v21  ;;  %v1083_v21 = vld [vmem:[%s1984_s4 + $0xe0] sm:$0xff] }
 0x7ba   :  { %v1403_v27 = vpack.c.bf16 %v1084_v26, %v1083_v21 }
 0x7bc   :  { %1404 = vmatpush3.bf16.msra.mxu0 %v1403_v27 }
 0x7bd   :  { %1405 = vmatprep.subr.bf16.mxu0 %v1474_v2 }
 0x7c0   :  { %1407 = vmatpush3.bf16.msra.mxu0 %v1406_v30 }
 0x81a   :  { %v733_v19 = vpop.permute.xlu1 %732 }
 0x81b   :  { %v735_v23 = vadd.f32 %v733_v19, %v730_v17 }
 0x81d   :  { %v740_v24 = vmul.f32 %v739_v14, %v735_v23 }
 0x81f   :  { %v1879_v25 = vadd.f32 %v740_v24, %v1782_v5  ;;  %v1894_v5 = vmul.f32 %v1660_v6, %v1649_v61  ;;  %v1906_v61 = vmul.f32 %v739_v14, %v727_v11  ;;  %v1089_v6 = vld [vmem:[%s1986_s6 + $0xc0] sm:$0xff] }
 0x820   :  { %v1409_v32 = vpack.c.bf16 %v1090_v1, %v1089_v6 }
 0x821   :  { %v1882_v16 = vmul.f32 %v754_v15, %v1879_v25 }
 0x822   :  { %1410 = vmatpush3.bf16.msra.mxu1 %v1409_v32 }
 0x823   :  { %775 = vperm.xlu1 %1435, %v1882_v16   ;;  %761 = vperm.xlu0 %1434, %v1882_v16  }
 0x824   :  { %1411 = vmatprep.subr.bf16.mxu1 %v1474_v2 }
 0x827   :  { %267 = vrot.lane.b32.xlu0 %v1894_v5, %s1479_s12 }
 0x828   :  { %1436 = vset.pattern.permute.xlu0 %v1475_v18  ;;  %v1092_v18 = vld [vmem:[%s1986_s6 + $0xd8] sm:$0xff] }
 0x829   :  { %v1412_v33 = vpack.c.bf16 %v1092_v18, %v1091_v31 }
 0x82b   :  { %745 = vrot.lane.b32.xlu0 %v1906_v61, %s1479_s12  ;;  %1413 = vmatpush3.bf16.msra.mxu1 %v1412_v33 }
 0x82c   :  { %1414 = vmatprep.subr.bf16.mxu1 %v1474_v2 }
 0x82f   :  { %1416 = vmatpush3.bf16.msra.mxu1 %v1415_v37 }
 0x830   :  { %1417 = vmatprep.subr.bf16.mxu1 %v1474_v2  ;;  %v1095_v2 = vld [vmem:[%s1986_s6 + $0xf0] sm:$0xff] }
 0x831   :  { %v1418_v49 = vpack.c.bf16 %v1096_v34, %v1095_v2 }
 0x833   :  { %1419 = vmatpush3.bf16.msra.mxu1 %v1418_v49 }
 0x8a2   :  { %v776_v41 = vpop.permute.xlu1 %775  ;;  %v762_v43 = vpop.permute.xlu0 %761 }
 0x8a3   :  { %v768_v44 = vmul.f32 %v767_v39, %v762_v43  ;;  %v782_v45 = vmul.f32 %v781_v40, %v776_v41 }
 0x8a5   :  { %v773_v46 = vadd.f32 %v1078_v42, %v768_v44 }
 0x8a6   :  { %v268_v15 = vpop.permute.xlu0 %267 }
 0x8a7   :  { %v783_v47 = vadd.f32 %v782_v45, %v773_v46  ;;  %v270_v21 = vadd.f32 %v268_v15, %v1894_v5 }
 0x8a9   :  { %v784_v48 = vmax.f32 %v783_v47, 0.0  ;;  %v504_v26 = vadd.f32 %v503_v63, %v270_v21 }
 0x8ab   :  { %1303 = vmatmul.mubr.msk.f32.vlgmr.msra.gmra.mrb[6].mxu0 %vm82_vm1, %v784_v48 }
 0x97e   :  { %v868_v51 = vpop.f32.mrb[6].mxu0 }
 0x97f   :  { %v869_v52 = vadd.f32 %v1087_v50, %v868_v51  ;;  %v1304_v53 = vpop.f32.mrb[7].mxu0 }
 0x981   :  { %v872_v54 = vmax.f32 %v869_v52, 0.0 }
 0x983   :  { %1322 = vmatmul.mubr.msk.f32.vlgmr.msra.gmra.mrb[6].mxu1 %vm82_vm1, %v872_v54 }
 0xa56   :  { %v956_v56 = vpop.f32.mrb[6].mxu1 }
 0xa57   :  { %v957_v57 = vadd.f32 %v1097_v55, %v956_v56  ;;  %v1323_v58 = vpop.f32.mrb[7].mxu1 }
 0xa59   :  { %v960_v22 = vmax.f32 %v957_v57, 0.0  ;;  %971 = vrot.lane.b32.xlu1 %v957_v57, %s1478_s30  ;;  %s1449_s30 = scalar_lea.vmem %s1018_s8, 128 }
 0xa5a   :  { %p1450_p0 = scmp.ne.s32.totalorder %s1018_s8, %s1449_s30  ;;  %p1455_p2 = scmp.lt.s32.totalorder %s1449_s30, %s1449_s30 }
 0xa5b   :  { %v966_v62 = vmul.f32 %v1099_v60, %v960_v22 }
 0xa5c   :  { %p1456_p3 = por %p1455_p2, %p1454_p1 }
 0xa5d   :  { %506 = vrot.lane.b32.xlu1 %v503_v63, %s1479_s12  ;;  %v981_v3 = vmul.f32 %v978_v0, %v966_v62  ;;  %v967_v10 = vmul.f32 1.442695, %v966_v62 }
 0xa5e   :  { %p1457_p4 = pnand %p1456_p3, %p1450_p0 }
 0xa5f   :  { %1443 = vpow2.f32 %v967_v10 }
 0xa61   :  { %984 = vrot.lane.b32.xlu1 %v981_v3, %s1479_s12 }
 0xa69   :  { %v1444_v11 = vpop.eup %1443 }
 0xa6a   :  { %v969_v12 = vmul.f32 %v1444_v11, %v1879_v25 }
 0xacb   :  { %v972_v7 = vpop.permute.xlu1 %971 }
 0xacc   :  { %v974_v9 = vadd.f32 %v972_v7, %v969_v12 }
 0xace   :  { %v979_v17 = vmul.f32 %v978_v0, %v974_v9 }
 0xacf   :  { %v507_v25 = vpop.permute.xlu1 %506 }
 0xad0   :  { %v980_v19 = vadd.f32 %v979_v17, %v1882_v16  ;;  %v509_v27 = vadd.f32 %v507_v25, %v504_v26  ;;  %v746_v16 = vpop.permute.xlu0 %745 }
 0xad2   :  { %1445 = vtanh.f32 %v980_v19  ;;  %v743_v28 = vadd.f32 %v1906_v61, %v509_v27 }
 0xad3   :  { %v985_v6 = vpop.permute.xlu1 %984 }
 0xad4   :  { %v748_v29 = vadd.f32 %v746_v16, %v743_v28 }
 0xad6   :  { %v982_v30 = vadd.f32 %v981_v3, %v748_v29 }
 0xad8   :  { %v987_v1 = vadd.f32 %v985_v6, %v982_v30 }
 0xadc   :  { %v1446_v20 = vpop.eup %1445 }
 0xadd   :  { %v989_v4 = vmul.f32 %v1446_v20, %v1446_v20  ;;  %v1001_v33 = vmul.f32 4.0, %v1446_v20 }
 0xadf   :  { %v990_v13 = vsub.f32 1.0, %v989_v4 }
 0xae1   :  { %v991_v8 = vmul.f32 4.0, %v990_v13 }
 0xae3   :  { %v992_v14 = vand.u32 2147483647, %v991_v8 }
 0xae5   :  { %1447 = vlog2.f32 %v992_v14 }
 0xaef   :  { %v1448_v23 = vpop.eup %1447 }
 0xaf0   :  { %v994_v24 = vmul.f32 0.6931472, %v1448_v23 }
 0xaf2   :  { %997 = vrot.lane.b32.xlu0 %v994_v24, %s1479_s12  ;;  %v995_v31 = vadd.f32 %v994_v24, %v987_v1 }
 0xb64   :  { %v998_v32 = vpop.permute.xlu0 %997 }
 0xb65   :  { %v1000_v18 = vadd.f32 %v998_v32, %v995_v31 }
 0xb67   :  { %1003 = vrot.lane.b32.xlu1 %v1000_v18, %s1480_s5 }
 0xbd9   :  { %v1004_v5 = vpop.permute.xlu1 %1003 }
 0xbda   :  { %v1007_v35 = vsel %vm1006_vm2, %v1001_v33, %v1004_v5 }
 0xbdb   :  { %v1009_v36 = vsel %vm1008_vm3, %v1007_v35, 0.0 }
 0xbdc   :  { %1010 = vst [vmem:[#allocation2] sm:$0xff] %v1009_v36 }
 0xbdd   :  { %1460 = shalt.err (!%p1457_p4)
}
 0xbde   :  { %s1461_s15 = scalar_lea.hbm %s1989_s9, 128 }
 0xbdf   :  { %p1462_p5 = scmp.ne.s32.totalorder %s1989_s9, %s1461_s15  ;;  %p1465_p6 = scmp.lt.u32.totalorder %s1461_s15, %s1989_s9 }
 0xbe1   :  { %p1467_p7 = pnand %p1465_p6, %p1462_p5 }
 0xbe3   :  { %1470 = shalt.err (!%p1467_p7)
}
 0xbe4   :  { %1020 = dma.vmem_to_hbm [thread:$0]  %s1018_s8, 128, %s1989_s9, [#allocation3]  }
 0xbe5   :  { %1471 = dma.done.wait [#allocation3], 128  }
 0xbe6   :  { %1472 = vsyncadd [#allocation3], 4294967168 }
 0xbe7   :  { %1024 = vsyncpa [#allocation3], 1 }

</bundles_post_ra>
